<compile_context>
chip_gen: v6e
topology: v6e:2x2x1
jax: 0.10.0
libtpu: 0.0.40
codegen_flags: <defaults>
</compile_context>

<pallas_src>
import functools

import jax
import jax.numpy as jnp
from jax import lax
from jax.experimental import pallas as pl
from jax.experimental.pallas import tpu as pltpu  # noqa: F401  (TPU backend)

EPS = 1e-5
LANE = 128


def simsiam_head_kernel(feat_ref,
                        w0_ref, w1_ref, w2_ref, wp0_ref, wp1_ref,
                        vec_ref,
                        out_ref, *, views):
    """Projection MLP head (encoder_q.fc) + predictor for BOTH views at once.

    feat_ref : (views*B, F)   f32 backbone features, both views stacked.
    w*_ref   : (K_real, 128)  bf16 weights; only the output dim is lane-padded.
    vec_ref  : (8, 128)       f32 packed gamma/beta/bias rows.
    out_ref  : (views*B, 256) f32; z in lanes [0,128), p in lanes [128,256).
    """
    n = feat_ref.shape[0]
    batch = n // views                      # per-view batch (BN population)

    x = feat_ref[...]

    # Packed per-feature vectors (each used exactly once below).
    g0, be0 = vec_ref[0:1, :], vec_ref[1:2, :]
    g1, be1 = vec_ref[2:3, :], vec_ref[3:4, :]
    gp0, bp0 = vec_ref[4:5, :], vec_ref[5:6, :]
    bp1 = vec_ref[6:7, :]

    def mm(a, w_ref):
        # MXU matmul on the stacked (views*B) batch: bf16 operands, f32 acc.
        # Slice the activation to the weight's real contraction width so no
        # zero K-rows are streamed through the MXU.
        k = w_ref.shape[0]
        return jnp.dot(a[:, :k].astype(jnp.bfloat16), w_ref[...],
                       preferred_element_type=jnp.float32)

    def bn_stats(h):
        # Train-mode BatchNorm1d stats over the per-view batch: batch mean and
        # biased variance (one pass), clamped against catastrophic cancellation.
        mu = jnp.mean(h, axis=0, keepdims=True)
        var = jnp.maximum(jnp.mean(h * h, axis=0, keepdims=True) - mu * mu, 0.0)
        return mu, var

    def bn_relu(h, gamma, beta):
        mu, var = bn_stats(h)
        scale = gamma * lax.rsqrt(var + EPS)            # rsqrt -> EUP slot
        return jnp.maximum(h * scale + (beta - mu * scale), 0.0)

    def bn_noaffine(h):
        mu, var = bn_stats(h)
        return (h - mu) * lax.rsqrt(var + EPS)

    def per_view(fn, h):
        # BatchNorm statistics must be per-view (the PyTorch module pushes each
        # view through the head separately); matmuls stay batched across views.
        return jnp.concatenate(
            [fn(h[v * batch:(v + 1) * batch]) for v in range(views)], axis=0)

    # ---- encoder_q.fc (projection MLP) ----
    # fc[0] Linear(F->H): bias dropped — it cancels exactly in fc[1]'s
    # train-mode BatchNorm mean subtraction.
    h = mm(x, w0_ref)
    h = per_view(lambda hv: bn_relu(hv, g0, be0), h)     # fc[1] BN + fc[2] ReLU
    # fc[3] Linear(H->H, bias=False)
    h = mm(h, w1_ref)
    h = per_view(lambda hv: bn_relu(hv, g1, be1), h)     # fc[4] BN + fc[5] ReLU
    # fc[6] Linear(H->D): (frozen) bias dropped — cancels in fc[7]'s BN.
    z = mm(h, w2_ref)
    z = per_view(bn_noaffine, z)                         # fc[7] BN(affine=False)

    # ---- predictor ----
    q = mm(z, wp0_ref)                                   # Linear(D->H, no bias)
    q = per_view(lambda qv: bn_relu(qv, gp0, bp0), q)    # BN + ReLU
    p = mm(q, wp1_ref) + bp1                             # Linear(H->D) + bias

    # Fused lane-dense output: one 256-lane store instead of two 128-lane ones.
    out_ref[...] = jnp.concatenate([z, p], axis=-1)


def simsiam_heads(feats, params, *, views=2):
    """feats: (views*B, F) float32.  Returns (views*B, 2*LANE) float32."""
    n = feats.shape[0]
    # No grid: a single kernel invocation handles both views; every operand is
    # a whole-array VMEM ref for the duration of the call (no pipeline, no dead
    # double-buffers, weights trivially resident).
    # TODO(synk): if the per-view batch ever grows to ~10K+ rows, switch BN to a
    # two-pass (stats, then normalize) form with a batch grid axis so the
    # activations no longer have to fit v7x's 64 MiB VMEM in one tile.
    return pl.pallas_call(
        functools.partial(simsiam_head_kernel, views=views),
        out_shape=jax.ShapeDtypeStruct((n, 2 * LANE), jnp.float32),
    )(feats, params["w0"], params["w1"], params["w2"],
      params["wp0"], params["wp1"], params["vecs"])


# TODO(synk): base_encoder is dependency-injected and not defined by the module;
# a minimal conv3x3 + ReLU + global-average-pool backbone stands in for it here
# (plain JAX glue outside the kernel).
def backbone(params, x_nchw):
    y = lax.conv_general_dilated(
        x_nchw, params["conv_w"],
        window_strides=(1, 1), padding="SAME",
        dimension_numbers=("NCHW", "OIHW", "NCHW"))
    y = jnp.maximum(y + params["conv_b"][None, :, None, None], 0.0)
    return jnp.mean(y, axis=(2, 3))          # global average pool -> (N, F)


def simsiam_forward(params, x1, x2, momentum_update=True, dim=64):
    del momentum_update  # unused in forward (matches the PyTorch module)
    B = x1.shape[0]
    # Shared encoder: run both views through the backbone as one batched call
    # (conv/ReLU/GAP are per-sample ops), feeding the head kernel directly with
    # the stacked (2B, F) features — no wrapper-side pad or stack of features.
    feats = backbone(params, jnp.concatenate([x1, x2], axis=0))
    out = simsiam_heads(feats, params, views=2)
    z1, z2 = out[:B, :dim], out[B:, :dim]
    p1, p2 = out[:B, LANE:LANE + dim], out[B:, LANE:LANE + dim]
    return ([p1, p2], [lax.stop_gradient(z1), lax.stop_gradient(z2)])


def init_params(key, in_ch=4, feat_dim=16, hidden_dim=32, dim=64):
    assert hidden_dim <= LANE and dim <= LANE, "lane packing assumes dims <= 128"
    ks = jax.random.split(key, 6)

    def w(k, shape, fan_in):
        return jax.random.normal(k, shape, jnp.float32) / jnp.sqrt(float(fan_in))

    def pad_lanes(m):
        # Pad only the output (lane) dim to 128; contraction dims keep their
        # real sizes (16/32/64 — already multiples of the bf16 sublane tile).
        return jnp.pad(m, ((0, 0), (0, LANE - m.shape[1])))

    # Seven gamma/beta/bias vectors packed into one (8, 128) f32 tile.
    # Rows: 0=g0 1=be0 2=g1 3=be1 4=gp0 5=bp0 6=bp1 (7 unused).
    # Padded lanes keep gamma=0, so no padding leaks into real outputs.
    # fc[0].bias and fc[6].bias are omitted entirely: each is followed by a
    # train-mode BatchNorm, which cancels any per-feature bias exactly.
    vecs = jnp.zeros((8, LANE), jnp.float32)
    vecs = vecs.at[0, :hidden_dim].set(1.0)   # g0
    vecs = vecs.at[2, :hidden_dim].set(1.0)   # g1
    vecs = vecs.at[4, :hidden_dim].set(1.0)   # gp0

    return {
        # backbone conv (stand-in encoder): (O, I, kH, kW), plain JAX, f32
        "conv_w": w(ks[0], (feat_dim, in_ch, 3, 3), in_ch * 9),
        "conv_b": jnp.zeros((feat_dim,), jnp.float32),
        # bf16 MXU weights, lane-padded output dim only
        "w0": pad_lanes(w(ks[1], (feat_dim, hidden_dim), feat_dim)).astype(jnp.bfloat16),      # fc[0]
        "w1": pad_lanes(w(ks[2], (hidden_dim, hidden_dim), hidden_dim)).astype(jnp.bfloat16),  # fc[3]
        "w2": pad_lanes(w(ks[3], (hidden_dim, dim), hidden_dim)).astype(jnp.bfloat16),         # fc[6]
        "wp0": pad_lanes(w(ks[4], (dim, hidden_dim), dim)).astype(jnp.bfloat16),               # predictor[0]
        "wp1": pad_lanes(w(ks[5], (hidden_dim, dim), hidden_dim)).astype(jnp.bfloat16),        # predictor[3]
        "vecs": vecs,
    }


if __name__ == "__main__":
    key = jax.random.PRNGKey(0)
    kp, k1, k2 = jax.random.split(key, 3)
    params = init_params(kp, in_ch=4, feat_dim=16, hidden_dim=32, dim=64)

    # Two augmented NCHW views.
    x1 = jax.random.normal(k1, (2, 4, 16, 16), jnp.float32)
    x2 = jax.random.normal(k2, (2, 4, 16, 16), jnp.float32)

    fwd = jax.jit(simsiam_forward)
    (p_list, z_list) = fwd(params, x1, x2)
    jax.block_until_ready((p_list, z_list))

    assert p_list[0].shape == (2, 64) and p_list[1].shape == (2, 64)
    assert z_list[0].shape == (2, 64) and z_list[1].shape == (2, 64)
    assert all(bool(jnp.all(jnp.isfinite(a))) for a in p_list + z_list)
    print("KERNEL_OK")
</pallas_src>

<mosaic_0001>
module attributes {stable_mosaic.version = 11 : i64} {
  func.func @simsiam_head_kernel(%arg0: memref<4x16xf32, #tpu.memory_space<vmem>>, %arg1: memref<16x128xbf16, #tpu.memory_space<vmem>>, %arg2: memref<32x128xbf16, #tpu.memory_space<vmem>>, %arg3: memref<32x128xbf16, #tpu.memory_space<vmem>>, %arg4: memref<64x128xbf16, #tpu.memory_space<vmem>>, %arg5: memref<32x128xbf16, #tpu.memory_space<vmem>>, %arg6: memref<8x128xf32, #tpu.memory_space<vmem>>, %arg7: memref<4x256xf32, #tpu.memory_space<vmem>>) attributes {dimension_semantics = [], scalar_prefetch = 0 : i64, scratch_operands = 0 : i64, tpu.core_type = #tpu.core_type<tc>} {
    %c0 = arith.constant 0 : index
    %c0_0 = arith.constant 0 : index
    %0 = vector.load %arg0[%c0, %c0_0] : memref<4x16xf32, #tpu.memory_space<vmem>>, vector<4x16xf32>
    %c0_1 = arith.constant 0 : index
    %c0_2 = arith.constant 0 : index
    %1 = vector.load %arg6[%c0_1, %c0_2] : memref<8x128xf32, #tpu.memory_space<vmem>>, vector<1x128xf32>
    %c1 = arith.constant 1 : index
    %c0_3 = arith.constant 0 : index
    %2 = vector.load %arg6[%c1, %c0_3] : memref<8x128xf32, #tpu.memory_space<vmem>>, vector<1x128xf32>
    %c2 = arith.constant 2 : index
    %c0_4 = arith.constant 0 : index
    %3 = vector.load %arg6[%c2, %c0_4] : memref<8x128xf32, #tpu.memory_space<vmem>>, vector<1x128xf32>
    %c3 = arith.constant 3 : index
    %c0_5 = arith.constant 0 : index
    %4 = vector.load %arg6[%c3, %c0_5] : memref<8x128xf32, #tpu.memory_space<vmem>>, vector<1x128xf32>
    %c4 = arith.constant 4 : index
    %c0_6 = arith.constant 0 : index
    %5 = vector.load %arg6[%c4, %c0_6] : memref<8x128xf32, #tpu.memory_space<vmem>>, vector<1x128xf32>
    %c5 = arith.constant 5 : index
    %c0_7 = arith.constant 0 : index
    %6 = vector.load %arg6[%c5, %c0_7] : memref<8x128xf32, #tpu.memory_space<vmem>>, vector<1x128xf32>
    %c6 = arith.constant 6 : index
    %c0_8 = arith.constant 0 : index
    %7 = vector.load %arg6[%c6, %c0_8] : memref<8x128xf32, #tpu.memory_space<vmem>>, vector<1x128xf32>
    %8 = arith.truncf %0 : vector<4x16xf32> to vector<4x16xbf16>
    %c0_9 = arith.constant 0 : index
    %c0_10 = arith.constant 0 : index
    %9 = vector.load %arg1[%c0_9, %c0_10] : memref<16x128xbf16, #tpu.memory_space<vmem>>, vector<16x128xbf16>
    %cst = arith.constant dense<0.000000e+00> : vector<4x128xf32>
    %10 = tpu.matmul %8, %9, %cst {dimension_numbers = #tpu.dot_dimension_numbers<[1], [0], [0], [1], [0, 0, 1, 1], [], []>} : vector<4x16xbf16>, vector<16x128xbf16>, vector<4x128xf32> -> vector<4x128xf32>
    %11 = vector.extract_strided_slice %10 {offsets = [0, 0], sizes = [2, 128], strides = [1, 1]} : vector<4x128xf32> to vector<2x128xf32>
    %cst_11 = arith.constant dense<0.000000e+00> : vector<128xf32>
    %12 = vector.multi_reduction <add>, %11, %cst_11 [0] : vector<2x128xf32> to vector<128xf32>
    %13 = vector.shape_cast %12 : vector<128xf32> to vector<1x128xf32>
    %cst_12 = arith.constant 2.000000e+00 : f32
    %14 = vector.broadcast %cst_12 : f32 to vector<1x128xf32>
    %15 = arith.divf %13, %14 : vector<1x128xf32>
    %16 = arith.mulf %11, %11 : vector<2x128xf32>
    %cst_13 = arith.constant dense<0.000000e+00> : vector<128xf32>
    %17 = vector.multi_reduction <add>, %16, %cst_13 [0] : vector<2x128xf32> to vector<128xf32>
    %18 = vector.shape_cast %17 : vector<128xf32> to vector<1x128xf32>
    %cst_14 = arith.constant 2.000000e+00 : f32
    %19 = vector.broadcast %cst_14 : f32 to vector<1x128xf32>
    %20 = arith.divf %18, %19 : vector<1x128xf32>
    %21 = arith.mulf %15, %15 : vector<1x128xf32>
    %22 = arith.subf %20, %21 : vector<1x128xf32>
    %cst_15 = arith.constant 0.000000e+00 : f32
    %23 = vector.broadcast %cst_15 : f32 to vector<1x128xf32>
    %24 = arith.maximumf %22, %23 : vector<1x128xf32>
    %cst_16 = arith.constant 9.99999974E-6 : f32
    %25 = vector.broadcast %cst_16 : f32 to vector<1x128xf32>
    %26 = arith.addf %24, %25 : vector<1x128xf32>
    %27 = math.rsqrt %26 : vector<1x128xf32>
    %28 = arith.mulf %1, %27 : vector<1x128xf32>
    %29 = vector.broadcast %28 : vector<1x128xf32> to vector<2x128xf32>
    %30 = arith.mulf %11, %29 : vector<2x128xf32>
    %31 = arith.mulf %15, %28 : vector<1x128xf32>
    %32 = arith.subf %2, %31 : vector<1x128xf32>
    %33 = vector.broadcast %32 : vector<1x128xf32> to vector<2x128xf32>
    %34 = arith.addf %30, %33 : vector<2x128xf32>
    %cst_17 = arith.constant 0.000000e+00 : f32
    %35 = vector.broadcast %cst_17 : f32 to vector<2x128xf32>
    %36 = arith.maximumf %34, %35 : vector<2x128xf32>
    %37 = vector.extract_strided_slice %10 {offsets = [2, 0], sizes = [2, 128], strides = [1, 1]} : vector<4x128xf32> to vector<2x128xf32>
    %cst_18 = arith.constant dense<0.000000e+00> : vector<128xf32>
    %38 = vector.multi_reduction <add>, %37, %cst_18 [0] : vector<2x128xf32> to vector<128xf32>
    %39 = vector.shape_cast %38 : vector<128xf32> to vector<1x128xf32>
    %cst_19 = arith.constant 2.000000e+00 : f32
    %40 = vector.broadcast %cst_19 : f32 to vector<1x128xf32>
    %41 = arith.divf %39, %40 : vector<1x128xf32>
    %42 = arith.mulf %37, %37 : vector<2x128xf32>
    %cst_20 = arith.constant dense<0.000000e+00> : vector<128xf32>
    %43 = vector.multi_reduction <add>, %42, %cst_20 [0] : vector<2x128xf32> to vector<128xf32>
    %44 = vector.shape_cast %43 : vector<128xf32> to vector<1x128xf32>
    %cst_21 = arith.constant 2.000000e+00 : f32
    %45 = vector.broadcast %cst_21 : f32 to vector<1x128xf32>
    %46 = arith.divf %44, %45 : vector<1x128xf32>
    %47 = arith.mulf %41, %41 : vector<1x128xf32>
    %48 = arith.subf %46, %47 : vector<1x128xf32>
    %cst_22 = arith.constant 0.000000e+00 : f32
    %49 = vector.broadcast %cst_22 : f32 to vector<1x128xf32>
    %50 = arith.maximumf %48, %49 : vector<1x128xf32>
    %cst_23 = arith.constant 9.99999974E-6 : f32
    %51 = vector.broadcast %cst_23 : f32 to vector<1x128xf32>
    %52 = arith.addf %50, %51 : vector<1x128xf32>
    %53 = math.rsqrt %52 : vector<1x128xf32>
    %54 = arith.mulf %1, %53 : vector<1x128xf32>
    %55 = vector.broadcast %54 : vector<1x128xf32> to vector<2x128xf32>
    %56 = arith.mulf %37, %55 : vector<2x128xf32>
    %57 = arith.mulf %41, %54 : vector<1x128xf32>
    %58 = arith.subf %2, %57 : vector<1x128xf32>
    %59 = vector.broadcast %58 : vector<1x128xf32> to vector<2x128xf32>
    %60 = arith.addf %56, %59 : vector<2x128xf32>
    %cst_24 = arith.constant 0.000000e+00 : f32
    %61 = vector.broadcast %cst_24 : f32 to vector<2x128xf32>
    %62 = arith.maximumf %60, %61 : vector<2x128xf32>
    %63 = tpu.concatenate %36, %62 in 0 : vector<2x128xf32>, vector<2x128xf32> -> vector<4x128xf32>
    %64 = vector.extract_strided_slice %63 {offsets = [0, 0], sizes = [4, 32], strides = [1, 1]} : vector<4x128xf32> to vector<4x32xf32>
    %65 = arith.truncf %64 : vector<4x32xf32> to vector<4x32xbf16>
    %c0_25 = arith.constant 0 : index
    %c0_26 = arith.constant 0 : index
    %66 = vector.load %arg2[%c0_25, %c0_26] : memref<32x128xbf16, #tpu.memory_space<vmem>>, vector<32x128xbf16>
    %cst_27 = arith.constant dense<0.000000e+00> : vector<4x128xf32>
    %67 = tpu.matmul %65, %66, %cst_27 {dimension_numbers = #tpu.dot_dimension_numbers<[1], [0], [0], [1], [0, 0, 1, 1], [], []>} : vector<4x32xbf16>, vector<32x128xbf16>, vector<4x128xf32> -> vector<4x128xf32>
    %68 = vector.extract_strided_slice %67 {offsets = [0, 0], sizes = [2, 128], strides = [1, 1]} : vector<4x128xf32> to vector<2x128xf32>
    %cst_28 = arith.constant dense<0.000000e+00> : vector<128xf32>
    %69 = vector.multi_reduction <add>, %68, %cst_28 [0] : vector<2x128xf32> to vector<128xf32>
    %70 = vector.shape_cast %69 : vector<128xf32> to vector<1x128xf32>
    %cst_29 = arith.constant 2.000000e+00 : f32
    %71 = vector.broadcast %cst_29 : f32 to vector<1x128xf32>
    %72 = arith.divf %70, %71 : vector<1x128xf32>
    %73 = arith.mulf %68, %68 : vector<2x128xf32>
    %cst_30 = arith.constant dense<0.000000e+00> : vector<128xf32>
    %74 = vector.multi_reduction <add>, %73, %cst_30 [0] : vector<2x128xf32> to vector<128xf32>
    %75 = vector.shape_cast %74 : vector<128xf32> to vector<1x128xf32>
    %cst_31 = arith.constant 2.000000e+00 : f32
    %76 = vector.broadcast %cst_31 : f32 to vector<1x128xf32>
    %77 = arith.divf %75, %76 : vector<1x128xf32>
    %78 = arith.mulf %72, %72 : vector<1x128xf32>
    %79 = arith.subf %77, %78 : vector<1x128xf32>
    %cst_32 = arith.constant 0.000000e+00 : f32
    %80 = vector.broadcast %cst_32 : f32 to vector<1x128xf32>
    %81 = arith.maximumf %79, %80 : vector<1x128xf32>
    %cst_33 = arith.constant 9.99999974E-6 : f32
    %82 = vector.broadcast %cst_33 : f32 to vector<1x128xf32>
    %83 = arith.addf %81, %82 : vector<1x128xf32>
    %84 = math.rsqrt %83 : vector<1x128xf32>
    %85 = arith.mulf %3, %84 : vector<1x128xf32>
    %86 = vector.broadcast %85 : vector<1x128xf32> to vector<2x128xf32>
    %87 = arith.mulf %68, %86 : vector<2x128xf32>
    %88 = arith.mulf %72, %85 : vector<1x128xf32>
    %89 = arith.subf %4, %88 : vector<1x128xf32>
    %90 = vector.broadcast %89 : vector<1x128xf32> to vector<2x128xf32>
    %91 = arith.addf %87, %90 : vector<2x128xf32>
    %cst_34 = arith.constant 0.000000e+00 : f32
    %92 = vector.broadcast %cst_34 : f32 to vector<2x128xf32>
    %93 = arith.maximumf %91, %92 : vector<2x128xf32>
    %94 = vector.extract_strided_slice %67 {offsets = [2, 0], sizes = [2, 128], strides = [1, 1]} : vector<4x128xf32> to vector<2x128xf32>
    %cst_35 = arith.constant dense<0.000000e+00> : vector<128xf32>
    %95 = vector.multi_reduction <add>, %94, %cst_35 [0] : vector<2x128xf32> to vector<128xf32>
    %96 = vector.shape_cast %95 : vector<128xf32> to vector<1x128xf32>
    %cst_36 = arith.constant 2.000000e+00 : f32
    %97 = vector.broadcast %cst_36 : f32 to vector<1x128xf32>
    %98 = arith.divf %96, %97 : vector<1x128xf32>
    %99 = arith.mulf %94, %94 : vector<2x128xf32>
    %cst_37 = arith.constant dense<0.000000e+00> : vector<128xf32>
    %100 = vector.multi_reduction <add>, %99, %cst_37 [0] : vector<2x128xf32> to vector<128xf32>
    %101 = vector.shape_cast %100 : vector<128xf32> to vector<1x128xf32>
    %cst_38 = arith.constant 2.000000e+00 : f32
    %102 = vector.broadcast %cst_38 : f32 to vector<1x128xf32>
    %103 = arith.divf %101, %102 : vector<1x128xf32>
    %104 = arith.mulf %98, %98 : vector<1x128xf32>
    %105 = arith.subf %103, %104 : vector<1x128xf32>
    %cst_39 = arith.constant 0.000000e+00 : f32
    %106 = vector.broadcast %cst_39 : f32 to vector<1x128xf32>
    %107 = arith.maximumf %105, %106 : vector<1x128xf32>
    %cst_40 = arith.constant 9.99999974E-6 : f32
    %108 = vector.broadcast %cst_40 : f32 to vector<1x128xf32>
    %109 = arith.addf %107, %108 : vector<1x128xf32>
    %110 = math.rsqrt %109 : vector<1x128xf32>
    %111 = arith.mulf %3, %110 : vector<1x128xf32>
    %112 = vector.broadcast %111 : vector<1x128xf32> to vector<2x128xf32>
    %113 = arith.mulf %94, %112 : vector<2x128xf32>
    %114 = arith.mulf %98, %111 : vector<1x128xf32>
    %115 = arith.subf %4, %114 : vector<1x128xf32>
    %116 = vector.broadcast %115 : vector<1x128xf32> to vector<2x128xf32>
    %117 = arith.addf %113, %116 : vector<2x128xf32>
    %cst_41 = arith.constant 0.000000e+00 : f32
    %118 = vector.broadcast %cst_41 : f32 to vector<2x128xf32>
    %119 = arith.maximumf %117, %118 : vector<2x128xf32>
    %120 = tpu.concatenate %93, %119 in 0 : vector<2x128xf32>, vector<2x128xf32> -> vector<4x128xf32>
    %121 = vector.extract_strided_slice %120 {offsets = [0, 0], sizes = [4, 32], strides = [1, 1]} : vector<4x128xf32> to vector<4x32xf32>
    %122 = arith.truncf %121 : vector<4x32xf32> to vector<4x32xbf16>
    %c0_42 = arith.constant 0 : index
    %c0_43 = arith.constant 0 : index
    %123 = vector.load %arg3[%c0_42, %c0_43] : memref<32x128xbf16, #tpu.memory_space<vmem>>, vector<32x128xbf16>
    %cst_44 = arith.constant dense<0.000000e+00> : vector<4x128xf32>
    %124 = tpu.matmul %122, %123, %cst_44 {dimension_numbers = #tpu.dot_dimension_numbers<[1], [0], [0], [1], [0, 0, 1, 1], [], []>} : vector<4x32xbf16>, vector<32x128xbf16>, vector<4x128xf32> -> vector<4x128xf32>
    %125 = vector.extract_strided_slice %124 {offsets = [0, 0], sizes = [2, 128], strides = [1, 1]} : vector<4x128xf32> to vector<2x128xf32>
    %cst_45 = arith.constant dense<0.000000e+00> : vector<128xf32>
    %126 = vector.multi_reduction <add>, %125, %cst_45 [0] : vector<2x128xf32> to vector<128xf32>
    %127 = vector.shape_cast %126 : vector<128xf32> to vector<1x128xf32>
    %cst_46 = arith.constant 2.000000e+00 : f32
    %128 = vector.broadcast %cst_46 : f32 to vector<1x128xf32>
    %129 = arith.divf %127, %128 : vector<1x128xf32>
    %130 = arith.mulf %125, %125 : vector<2x128xf32>
    %cst_47 = arith.constant dense<0.000000e+00> : vector<128xf32>
    %131 = vector.multi_reduction <add>, %130, %cst_47 [0] : vector<2x128xf32> to vector<128xf32>
    %132 = vector.shape_cast %131 : vector<128xf32> to vector<1x128xf32>
    %cst_48 = arith.constant 2.000000e+00 : f32
    %133 = vector.broadcast %cst_48 : f32 to vector<1x128xf32>
    %134 = arith.divf %132, %133 : vector<1x128xf32>
    %135 = arith.mulf %129, %129 : vector<1x128xf32>
    %136 = arith.subf %134, %135 : vector<1x128xf32>
    %cst_49 = arith.constant 0.000000e+00 : f32
    %137 = vector.broadcast %cst_49 : f32 to vector<1x128xf32>
    %138 = arith.maximumf %136, %137 : vector<1x128xf32>
    %139 = vector.broadcast %129 : vector<1x128xf32> to vector<2x128xf32>
    %140 = arith.subf %125, %139 : vector<2x128xf32>
    %cst_50 = arith.constant 9.99999974E-6 : f32
    %141 = vector.broadcast %cst_50 : f32 to vector<1x128xf32>
    %142 = arith.addf %138, %141 : vector<1x128xf32>
    %143 = math.rsqrt %142 : vector<1x128xf32>
    %144 = vector.broadcast %143 : vector<1x128xf32> to vector<2x128xf32>
    %145 = arith.mulf %140, %144 : vector<2x128xf32>
    %146 = vector.extract_strided_slice %124 {offsets = [2, 0], sizes = [2, 128], strides = [1, 1]} : vector<4x128xf32> to vector<2x128xf32>
    %cst_51 = arith.constant dense<0.000000e+00> : vector<128xf32>
    %147 = vector.multi_reduction <add>, %146, %cst_51 [0] : vector<2x128xf32> to vector<128xf32>
    %148 = vector.shape_cast %147 : vector<128xf32> to vector<1x128xf32>
    %cst_52 = arith.constant 2.000000e+00 : f32
    %149 = vector.broadcast %cst_52 : f32 to vector<1x128xf32>
    %150 = arith.divf %148, %149 : vector<1x128xf32>
    %151 = arith.mulf %146, %146 : vector<2x128xf32>
    %cst_53 = arith.constant dense<0.000000e+00> : vector<128xf32>
    %152 = vector.multi_reduction <add>, %151, %cst_53 [0] : vector<2x128xf32> to vector<128xf32>
    %153 = vector.shape_cast %152 : vector<128xf32> to vector<1x128xf32>
    %cst_54 = arith.constant 2.000000e+00 : f32
    %154 = vector.broadcast %cst_54 : f32 to vector<1x128xf32>
    %155 = arith.divf %153, %154 : vector<1x128xf32>
    %156 = arith.mulf %150, %150 : vector<1x128xf32>
    %157 = arith.subf %155, %156 : vector<1x128xf32>
    %cst_55 = arith.constant 0.000000e+00 : f32
    %158 = vector.broadcast %cst_55 : f32 to vector<1x128xf32>
    %159 = arith.maximumf %157, %158 : vector<1x128xf32>
    %160 = vector.broadcast %150 : vector<1x128xf32> to vector<2x128xf32>
    %161 = arith.subf %146, %160 : vector<2x128xf32>
    %cst_56 = arith.constant 9.99999974E-6 : f32
    %162 = vector.broadcast %cst_56 : f32 to vector<1x128xf32>
    %163 = arith.addf %159, %162 : vector<1x128xf32>
    %164 = math.rsqrt %163 : vector<1x128xf32>
    %165 = vector.broadcast %164 : vector<1x128xf32> to vector<2x128xf32>
    %166 = arith.mulf %161, %165 : vector<2x128xf32>
    %167 = tpu.concatenate %145, %166 in 0 : vector<2x128xf32>, vector<2x128xf32> -> vector<4x128xf32>
    %168 = vector.extract_strided_slice %167 {offsets = [0, 0], sizes = [4, 64], strides = [1, 1]} : vector<4x128xf32> to vector<4x64xf32>
    %169 = arith.truncf %168 : vector<4x64xf32> to vector<4x64xbf16>
    %c0_57 = arith.constant 0 : index
    %c0_58 = arith.constant 0 : index
    %170 = vector.load %arg4[%c0_57, %c0_58] : memref<64x128xbf16, #tpu.memory_space<vmem>>, vector<64x128xbf16>
    %cst_59 = arith.constant dense<0.000000e+00> : vector<4x128xf32>
    %171 = tpu.matmul %169, %170, %cst_59 {dimension_numbers = #tpu.dot_dimension_numbers<[1], [0], [0], [1], [0, 0, 1, 1], [], []>} : vector<4x64xbf16>, vector<64x128xbf16>, vector<4x128xf32> -> vector<4x128xf32>
    %172 = vector.extract_strided_slice %171 {offsets = [0, 0], sizes = [2, 128], strides = [1, 1]} : vector<4x128xf32> to vector<2x128xf32>
    %cst_60 = arith.constant dense<0.000000e+00> : vector<128xf32>
    %173 = vector.multi_reduction <add>, %172, %cst_60 [0] : vector<2x128xf32> to vector<128xf32>
    %174 = vector.shape_cast %173 : vector<128xf32> to vector<1x128xf32>
    %cst_61 = arith.constant 2.000000e+00 : f32
    %175 = vector.broadcast %cst_61 : f32 to vector<1x128xf32>
    %176 = arith.divf %174, %175 : vector<1x128xf32>
    %177 = arith.mulf %172, %172 : vector<2x128xf32>
    %cst_62 = arith.constant dense<0.000000e+00> : vector<128xf32>
    %178 = vector.multi_reduction <add>, %177, %cst_62 [0] : vector<2x128xf32> to vector<128xf32>
    %179 = vector.shape_cast %178 : vector<128xf32> to vector<1x128xf32>
    %cst_63 = arith.constant 2.000000e+00 : f32
    %180 = vector.broadcast %cst_63 : f32 to vector<1x128xf32>
    %181 = arith.divf %179, %180 : vector<1x128xf32>
    %182 = arith.mulf %176, %176 : vector<1x128xf32>
    %183 = arith.subf %181, %182 : vector<1x128xf32>
    %cst_64 = arith.constant 0.000000e+00 : f32
    %184 = vector.broadcast %cst_64 : f32 to vector<1x128xf32>
    %185 = arith.maximumf %183, %184 : vector<1x128xf32>
    %cst_65 = arith.constant 9.99999974E-6 : f32
    %186 = vector.broadcast %cst_65 : f32 to vector<1x128xf32>
    %187 = arith.addf %185, %186 : vector<1x128xf32>
    %188 = math.rsqrt %187 : vector<1x128xf32>
    %189 = arith.mulf %5, %188 : vector<1x128xf32>
    %190 = vector.broadcast %189 : vector<1x128xf32> to vector<2x128xf32>
    %191 = arith.mulf %172, %190 : vector<2x128xf32>
    %192 = arith.mulf %176, %189 : vector<1x128xf32>
    %193 = arith.subf %6, %192 : vector<1x128xf32>
    %194 = vector.broadcast %193 : vector<1x128xf32> to vector<2x128xf32>
    %195 = arith.addf %191, %194 : vector<2x128xf32>
    %cst_66 = arith.constant 0.000000e+00 : f32
    %196 = vector.broadcast %cst_66 : f32 to vector<2x128xf32>
    %197 = arith.maximumf %195, %196 : vector<2x128xf32>
    %198 = vector.extract_strided_slice %171 {offsets = [2, 0], sizes = [2, 128], strides = [1, 1]} : vector<4x128xf32> to vector<2x128xf32>
    %cst_67 = arith.constant dense<0.000000e+00> : vector<128xf32>
    %199 = vector.multi_reduction <add>, %198, %cst_67 [0] : vector<2x128xf32> to vector<128xf32>
    %200 = vector.shape_cast %199 : vector<128xf32> to vector<1x128xf32>
    %cst_68 = arith.constant 2.000000e+00 : f32
    %201 = vector.broadcast %cst_68 : f32 to vector<1x128xf32>
    %202 = arith.divf %200, %201 : vector<1x128xf32>
    %203 = arith.mulf %198, %198 : vector<2x128xf32>
    %cst_69 = arith.constant dense<0.000000e+00> : vector<128xf32>
    %204 = vector.multi_reduction <add>, %203, %cst_69 [0] : vector<2x128xf32> to vector<128xf32>
    %205 = vector.shape_cast %204 : vector<128xf32> to vector<1x128xf32>
    %cst_70 = arith.constant 2.000000e+00 : f32
    %206 = vector.broadcast %cst_70 : f32 to vector<1x128xf32>
    %207 = arith.divf %205, %206 : vector<1x128xf32>
    %208 = arith.mulf %202, %202 : vector<1x128xf32>
    %209 = arith.subf %207, %208 : vector<1x128xf32>
    %cst_71 = arith.constant 0.000000e+00 : f32
    %210 = vector.broadcast %cst_71 : f32 to vector<1x128xf32>
    %211 = arith.maximumf %209, %210 : vector<1x128xf32>
    %cst_72 = arith.constant 9.99999974E-6 : f32
    %212 = vector.broadcast %cst_72 : f32 to vector<1x128xf32>
    %213 = arith.addf %211, %212 : vector<1x128xf32>
    %214 = math.rsqrt %213 : vector<1x128xf32>
    %215 = arith.mulf %5, %214 : vector<1x128xf32>
    %216 = vector.broadcast %215 : vector<1x128xf32> to vector<2x128xf32>
    %217 = arith.mulf %198, %216 : vector<2x128xf32>
    %218 = arith.mulf %202, %215 : vector<1x128xf32>
    %219 = arith.subf %6, %218 : vector<1x128xf32>
    %220 = vector.broadcast %219 : vector<1x128xf32> to vector<2x128xf32>
    %221 = arith.addf %217, %220 : vector<2x128xf32>
    %cst_73 = arith.constant 0.000000e+00 : f32
    %222 = vector.broadcast %cst_73 : f32 to vector<2x128xf32>
    %223 = arith.maximumf %221, %222 : vector<2x128xf32>
    %224 = tpu.concatenate %197, %223 in 0 : vector<2x128xf32>, vector<2x128xf32> -> vector<4x128xf32>
    %225 = vector.extract_strided_slice %224 {offsets = [0, 0], sizes = [4, 32], strides = [1, 1]} : vector<4x128xf32> to vector<4x32xf32>
    %226 = arith.truncf %225 : vector<4x32xf32> to vector<4x32xbf16>
    %c0_74 = arith.constant 0 : index
    %c0_75 = arith.constant 0 : index
    %227 = vector.load %arg5[%c0_74, %c0_75] : memref<32x128xbf16, #tpu.memory_space<vmem>>, vector<32x128xbf16>
    %cst_76 = arith.constant dense<0.000000e+00> : vector<4x128xf32>
    %228 = tpu.matmul %226, %227, %cst_76 {dimension_numbers = #tpu.dot_dimension_numbers<[1], [0], [0], [1], [0, 0, 1, 1], [], []>} : vector<4x32xbf16>, vector<32x128xbf16>, vector<4x128xf32> -> vector<4x128xf32>
    %229 = vector.broadcast %7 : vector<1x128xf32> to vector<4x128xf32>
    %230 = arith.addf %228, %229 : vector<4x128xf32>
    %231 = tpu.concatenate %167, %230 in 1 : vector<4x128xf32>, vector<4x128xf32> -> vector<4x256xf32>
    %c0_77 = arith.constant 0 : index
    %c0_78 = arith.constant 0 : index
    %232 = vector.load %arg7[%c0_77, %c0_78] : memref<4x256xf32, #tpu.memory_space<vmem>>, vector<4x256xf32>
    tpu.vector_store %arg7[%c0_77, %c0_78], %231 {strides = array<i32>} : memref<4x256xf32, #tpu.memory_space<vmem>>, vector<4x256xf32>,
    return
  }
}

</mosaic_0001>

<bundles_post_ra>
// kernel: simsiam_forward.1
= control target key start
LH: loop header
LB: loop body
LE: loop exit
PB: predicated region body
PF: predicated region fallthrough
CT: control target
= control target key end

     0   :  { %v753_v0 = vmov 0.0   ;;  %vm754_vm0 = vmmov 0   ;;  %vm44_vm1 = vcmask 130048   ;;  %vm88_vm2 = vcmask 1041408   ;;  %s942_s1 = inlined_call_operand.vmem [shape: bf16[16,128], index: 1, kind: input, shape index: {}]   ;;  %s943_s0 = inlined_call_operand.vmem [shape: f32[4,16], index: 0, kind: input, shape index: {}]   ;;  %s944_s2 = inlined_call_operand.vmem [shape: bf16[32,128], index: 2, kind: input, shape index: {}]   ;;  %s945_s6 = inlined_call_operand.vmem [shape: f32[8,128], index: 6, kind: input, shape index: {}]   ;;  %s946_s3 = inlined_call_operand.vmem [shape: bf16[32,128], index: 3, kind: input, shape index: {}]   ;;  %s947_s4 = inlined_call_operand.vmem [shape: bf16[64,128], index: 4, kind: input, shape index: {}]   ;;  %s948_s5 = inlined_call_operand.vmem [shape: bf16[32,128], index: 5, kind: input, shape index: {}]   ;;  %s949_s7 = inlined_call_operand.vmem [shape: f32[4,256], index: 7, kind: output, shape index: {}]  }
   0x1   :  { %682 = vmatprep.subr.bf16.mxu0 %v753_v0  ;;  %v726_v1 = vld [vmem:[%s942_s1] sm:$0xff]   ;;  %684 = vmatprep.mubr.msk.bf16.mxu0 %vm754_vm0, %v753_v0  ;;  %v727_v4 = vld [vmem:[%s944_s2 + $0x8] sm:$0xff]   ;;  %v113_v53 = vlaneseq  ;;  %vm185_vm3 = vcmask 261120   ;;  %vm454_vm4 = vcmask 523264  }
   0x2   :  { %v27_v2 = vld [vmem:[%s943_s0] sm:$0xf]  ;;  %688 = vmatprep.subr.bf16.mxu1 %v753_v0  ;;  %692 = vmatprep.mubr.msk.bf16.mxu1 %vm754_vm0, %v753_v0 }
   0x3   :  { %683 = vmatpush3.bf16.msra.mxu0 %v726_v1  ;;  %v35_v3 = vpack.c.bf16 %v27_v2, %v27_v2  ;;  %689 = vmatpush3.bf16.msra.mxu1 %v727_v4  ;;  %v728_v5 = vld [vmem:[%s944_s2] sm:$0xff]   ;;  %v114_v54 = vshrl.u32 %v113_v53, 7 }
   0x4   :  { %696 = vmatprep.subr.bf16.mxu0 %v753_v0  ;;  %690 = vmatprep.subr.bf16.mxu1 %v753_v0  ;;  %v28_v55 = vld [vmem:[%s945_s6] sm:$0x1]  ;;  %v29_v60 = vld [vmem:[%s945_s6 + $0x1] sm:$0x1] }
   0x5   :  { %v831_v56 = vsub.s32 0, %v114_v54 }
   0x6   :  { %685 = vmatmul.mubr.msk.bf16.vlgmr.msra.gmra.mxu0 %vm44_vm1, %v35_v3 }
   0x7   :  { %700 = vmatprep.mubr.msk.bf16.mxu0 %vm754_vm0, %v753_v0  ;;  %691 = vmatpush3.bf16.msra.mxu1 %v728_v5 }
   0x8   :  { %704 = vmatprep.subr.bf16.mxu1 %v753_v0 }
  0xc6   :  { %v818_v6 = vpop.f32.mrf.mxu0 }
  0xc7   :  { %v89_v7 = vsel %vm88_vm2, %v818_v6, 0.0  ;;  %v98_v8 = vmul.f32 %v818_v6, %v818_v6  ;;  %v127_v9 = vrot.slane %v818_v6, 2 }
  0xc8   :  { %v90_v10 = vrot.slane %v89_v7, 4  ;;  %v686_v11 = vpop.f32.mrf.mxu0 }
  0xc9   :  { %v99_v12 = vsel %vm88_vm2, %v98_v8, 0.0  ;;  %v129_v13 = vsel %vm88_vm2, %v127_v9, 0.0  ;;  %v138_v14 = vrot.slane %v98_v8, 2 }
  0xca   :  { %v91_v15 = vadd.f32 %v90_v10, %v89_v7  ;;  %v100_v16 = vrot.slane %v99_v12, 4  ;;  %v130_v17 = vrot.slane %v129_v13, 4  ;;  %v85_v18 = vpop.f32.mrf.mxu0 }
  0xcb   :  { %v140_v19 = vsel %vm88_vm2, %v138_v14, 0.0 }
  0xcc   :  { %v92_v20 = vrot.slane %v91_v15, 2  ;;  %v101_v21 = vadd.f32 %v100_v16, %v99_v12  ;;  %v131_v22 = vadd.f32 %v130_v17, %v129_v13  ;;  %v141_v23 = vrot.slane %v140_v19, 4  ;;  %v687_v24 = vpop.f32.mrf.mxu0  ;;  %v729_v16 = vld [vmem:[%s946_s3 + $0x8] sm:$0xff]  }
  0xcd   :  { %697 = vmatpush3.bf16.msra.mxu0 %v729_v16 }
  0xce   :  { %v93_v25 = vadd.f32 %v92_v20, %v91_v15  ;;  %v102_v26 = vrot.slane %v101_v21, 2  ;;  %v132_v27 = vrot.slane %v131_v22, 2  ;;  %v142_v28 = vadd.f32 %v141_v23, %v140_v19  ;;  %698 = vmatprep.subr.bf16.mxu0 %v753_v0 }
  0xd0   :  { %v94_v29 = vrot.slane %v93_v25, 1  ;;  %v103_v30 = vadd.f32 %v102_v26, %v101_v21  ;;  %v133_v31 = vadd.f32 %v132_v27, %v131_v22  ;;  %v143_v32 = vrot.slane %v142_v28, 2 }
  0xd2   :  { %v95_v33 = vadd.f32 %v94_v29, %v93_v25  ;;  %v104_v34 = vrot.slane %v103_v30, 1  ;;  %v134_v35 = vrot.slane %v133_v31, 1  ;;  %v144_v36 = vadd.f32 %v143_v32, %v142_v28 }
  0xd4   :  { %v97_v37 = vmul.f32 0.5, %v95_v33  ;;  %v105_v38 = vadd.f32 %v104_v34, %v103_v30  ;;  %v135_v39 = vadd.f32 %v134_v35, %v133_v31  ;;  %v145_v40 = vrot.slane %v144_v36, 1 }
  0xd6   :  { %v106_v41 = vmul.f32 0.5, %v105_v38  ;;  %v107_v42 = vmul.f32 %v97_v37, %v97_v37  ;;  %v136_v43 = vmul.f32 0.5, %v135_v39  ;;  %v146_v44 = vadd.f32 %v145_v40, %v144_v36 }
  0xd8   :  { %v108_v45 = vsub.f32 %v106_v41, %v107_v42  ;;  %v147_v46 = vmul.f32 0.5, %v146_v44  ;;  %v148_v47 = vmul.f32 %v136_v43, %v136_v43 }
  0xda   :  { %v109_v48 = vmax.f32 %v108_v45, 0.0  ;;  %v149_v49 = vsub.f32 %v147_v46, %v148_v47 }
  0xdc   :  { %v110_v50 = vadd.f32 1e-05, %v109_v48  ;;  %v150_v51 = vmax.f32 %v149_v49, 0.0 }
  0xde   :  { %737 = vrsqrt.f32 %v110_v50  ;;  %v151_v52 = vadd.f32 1e-05, %v150_v51 }
  0xe0   :  { %739 = vrsqrt.f32 %v151_v52 }
  0xeb   :  { %v738_v57 = vpop.eup %737 }
  0xec   :  { %v112_v58 = vmul.f32 %v738_v57, %v28_v55 }
  0xed   :  { %v740_v59 = vpop.eup %739 }
  0xee   :  { %v116_v61 = vrot.slane %v112_v58, %v831_v56  ;;  %v118_v62 = vmul.f32 %v112_v58, %v97_v37  ;;  %v153_v63 = vmul.f32 %v740_v59, %v28_v55 }
  0xf0   :  { %v119_v1 = vsub.f32 %v29_v60, %v118_v62  ;;  %v157_v2 = vrot.slane %v153_v63, %v831_v56  ;;  %v159_v3 = vmul.f32 %v153_v63, %v136_v43  ;;  %v117_v4 = vmul.f32 %v116_v61, %v818_v6 }
  0xf2   :  { %v123_v5 = vrot.slane %v119_v1, %v831_v56  ;;  %v160_v7 = vsub.f32 %v29_v60, %v159_v3  ;;  %v158_v9 = vmul.f32 %v157_v2, %v818_v6  ;;  %v730_v6 = vld [vmem:[%s946_s3] sm:$0xff]  }
  0xf3   :  { %699 = vmatpush3.bf16.msra.mxu0 %v730_v6  ;;  %v30_v2 = vld [vmem:[%s945_s6 + $0x2] sm:$0x1] }
  0xf4   :  { %v124_v8 = vadd.f32 %v123_v5, %v117_v4  ;;  %v164_v10 = vrot.slane %v160_v7, %v831_v56  ;;  %716 = vmatprep.subr.bf16.mxu0 %v753_v0  ;;  %v31_v7 = vld [vmem:[%s945_s6 + $0x3] sm:$0x1] }
  0xf6   :  { %v165_v11 = vadd.f32 %v164_v10, %v158_v9  ;;  %v125_v12 = vmax.f32 %v124_v8, 0.0 }
  0xf8   :  { %v166_v13 = vmax.f32 %v165_v11, 0.0 }
  0xfa   :  { %v167_v14 = vsel %vm88_vm2, %v125_v12, %v166_v13 }
  0xfb   :  { %v168_v15 = vpack.c.bf16 %v167_v14, %v167_v14 }
  0xfd   :  { %693 = vmatmul.mubr.msk.bf16.vlgmr.msra.gmra.mxu1 %vm185_vm3, %v168_v15 }
  0xfe   :  { %712 = vmatprep.mubr.msk.bf16.mxu1 %vm754_vm0, %v753_v0 }
 0x1bd   :  { %v854_v17 = vpop.f32.mrf.mxu1 }
 0x1be   :  { %v229_v18 = vsel %vm88_vm2, %v854_v17, 0.0  ;;  %v237_v19 = vmul.f32 %v854_v17, %v854_v17  ;;  %v266_v20 = vrot.slane %v854_v17, 2 }
 0x1bf   :  { %v230_v21 = vrot.slane %v229_v18, 4  ;;  %v694_v22 = vpop.f32.mrf.mxu1 }
 0x1c0   :  { %v238_v23 = vsel %vm88_vm2, %v237_v19, 0.0  ;;  %v268_v24 = vsel %vm88_vm2, %v266_v20, 0.0  ;;  %v277_v25 = vrot.slane %v237_v19, 2 }
 0x1c1   :  { %v231_v26 = vadd.f32 %v230_v21, %v229_v18  ;;  %v239_v27 = vrot.slane %v238_v23, 4  ;;  %v269_v28 = vrot.slane %v268_v24, 4  ;;  %v226_v29 = vpop.f32.mrf.mxu1 }
 0x1c2   :  { %v279_v30 = vsel %vm88_vm2, %v277_v25, 0.0  ;;  %v731_v25 = vld [vmem:[%s947_s4 + $0x18] sm:$0xff]  }
 0x1c3   :  { %v232_v31 = vrot.slane %v231_v26, 2  ;;  %v240_v32 = vadd.f32 %v239_v27, %v238_v23  ;;  %v270_v33 = vadd.f32 %v269_v28, %v268_v24  ;;  %v280_v34 = vrot.slane %v279_v30, 4  ;;  %v695_v35 = vpop.f32.mrf.mxu1  ;;  %705 = vmatpush3.bf16.msra.mxu1 %v731_v25  ;;  %v734_v27 = vld [vmem:[%s947_s4] sm:$0xff]  }
 0x1c4   :  { %706 = vmatprep.subr.bf16.mxu1 %v753_v0 }
 0x1c5   :  { %v233_v36 = vadd.f32 %v232_v31, %v231_v26  ;;  %v241_v37 = vrot.slane %v240_v32, 2  ;;  %v271_v38 = vrot.slane %v270_v33, 2  ;;  %v281_v39 = vadd.f32 %v280_v34, %v279_v30  ;;  %v733_v26 = vld [vmem:[%s947_s4 + $0x8] sm:$0xff]  }
 0x1c7   :  { %v234_v40 = vrot.slane %v233_v36, 1  ;;  %v242_v41 = vadd.f32 %v241_v37, %v240_v32  ;;  %v272_v42 = vadd.f32 %v271_v38, %v270_v33  ;;  %v282_v43 = vrot.slane %v281_v39, 2 }
 0x1c9   :  { %v235_v44 = vadd.f32 %v234_v40, %v233_v36  ;;  %v243_v45 = vrot.slane %v242_v41, 1  ;;  %v273_v46 = vrot.slane %v272_v42, 1  ;;  %v283_v47 = vadd.f32 %v282_v43, %v281_v39 }
 0x1cb   :  { %v236_v48 = vmul.f32 0.5, %v235_v44  ;;  %v244_v49 = vadd.f32 %v243_v45, %v242_v41  ;;  %v274_v50 = vadd.f32 %v273_v46, %v272_v42  ;;  %v284_v51 = vrot.slane %v283_v47, 1 }
 0x1cd   :  { %v245_v52 = vmul.f32 0.5, %v244_v49  ;;  %v246_v53 = vmul.f32 %v236_v48, %v236_v48  ;;  %v275_v54 = vmul.f32 0.5, %v274_v50  ;;  %v285_v55 = vadd.f32 %v284_v51, %v283_v47 }
 0x1cf   :  { %v247_v57 = vsub.f32 %v245_v52, %v246_v53  ;;  %v286_v58 = vmul.f32 0.5, %v285_v55  ;;  %v287_v59 = vmul.f32 %v275_v54, %v275_v54 }
 0x1d1   :  { %v248_v60 = vmax.f32 %v247_v57, 0.0  ;;  %v288_v61 = vsub.f32 %v286_v58, %v287_v59 }
 0x1d3   :  { %v249_v62 = vadd.f32 1e-05, %v248_v60  ;;  %v289_v63 = vmax.f32 %v288_v61, 0.0 }
 0x1d5   :  { %741 = vrsqrt.f32 %v249_v62  ;;  %v290_v1 = vadd.f32 1e-05, %v289_v63 }
 0x1d7   :  { %743 = vrsqrt.f32 %v290_v1 }
 0x1e2   :  { %v742_v3 = vpop.eup %741 }
 0x1e3   :  { %v251_v4 = vmul.f32 %v742_v3, %v30_v2 }
 0x1e4   :  { %v744_v5 = vpop.eup %743 }
 0x1e5   :  { %v255_v8 = vrot.slane %v251_v4, %v831_v56  ;;  %v257_v9 = vmul.f32 %v251_v4, %v236_v48  ;;  %v292_v10 = vmul.f32 %v744_v5, %v30_v2 }
 0x1e7   :  { %v258_v11 = vsub.f32 %v31_v7, %v257_v9  ;;  %v296_v12 = vrot.slane %v292_v10, %v831_v56  ;;  %v298_v13 = vmul.f32 %v292_v10, %v275_v54  ;;  %v256_v14 = vmul.f32 %v255_v8, %v854_v17 }
 0x1e9   :  { %v262_v15 = vrot.slane %v258_v11, %v831_v56  ;;  %v299_v16 = vsub.f32 %v31_v7, %v298_v13  ;;  %v297_v18 = vmul.f32 %v296_v12, %v854_v17  ;;  %v732_v17 = vld [vmem:[%s947_s4 + $0x10] sm:$0xff]  }
 0x1ea   :  { %707 = vmatpush3.bf16.msra.mxu1 %v732_v17 }
 0x1eb   :  { %v263_v6 = vadd.f32 %v262_v15, %v256_v14  ;;  %v303_v19 = vrot.slane %v299_v16, %v831_v56  ;;  %708 = vmatprep.subr.bf16.mxu1 %v753_v0 }
 0x1ed   :  { %v304_v20 = vadd.f32 %v303_v19, %v297_v18  ;;  %v264_v21 = vmax.f32 %v263_v6, 0.0 }
 0x1ee   :  { %709 = vmatpush3.bf16.msra.mxu1 %v733_v26 }
 0x1ef   :  { %v305_v22 = vmax.f32 %v304_v20, 0.0  ;;  %710 = vmatprep.subr.bf16.mxu1 %v753_v0 }
 0x1f1   :  { %v306_v23 = vsel %vm88_vm2, %v264_v21, %v305_v22  ;;  %v735_v22 = vld [vmem:[%s948_s5 + $0x8] sm:$0xff]  }
 0x1f2   :  { %v307_v24 = vpack.c.bf16 %v306_v23, %v306_v23  ;;  %711 = vmatpush3.bf16.msra.mxu1 %v734_v27  ;;  %v736_v23 = vld [vmem:[%s948_s5] sm:$0xff]  }
 0x1f4   :  { %701 = vmatmul.mubr.msk.bf16.vlgmr.msra.gmra.mxu0 %vm185_vm3, %v307_v24 }
 0x1f5   :  { %720 = vmatprep.mubr.msk.bf16.mxu0 %vm754_vm0, %v753_v0  ;;  %717 = vmatpush3.bf16.msra.mxu0 %v735_v22 }
 0x1f6   :  { %718 = vmatprep.subr.bf16.mxu0 %v753_v0 }
 0x1f9   :  { %719 = vmatpush3.bf16.msra.mxu0 %v736_v23 }
 0x2b4   :  { %v361_v28 = vpop.f32.mrf.mxu0 }
 0x2b5   :  { %v367_v29 = vsel %vm88_vm2, %v361_v28, 0.0  ;;  %v375_v30 = vmul.f32 %v361_v28, %v361_v28  ;;  %v392_v31 = vrot.slane %v361_v28, 2 }
 0x2b6   :  { %v368_v32 = vrot.slane %v367_v29, 4  ;;  %v702_v33 = vpop.f32.mrf.mxu0 }
 0x2b7   :  { %v376_v34 = vsel %vm88_vm2, %v375_v30, 0.0  ;;  %v394_v35 = vsel %vm88_vm2, %v392_v31, 0.0  ;;  %v403_v36 = vrot.slane %v375_v30, 2 }
 0x2b8   :  { %v369_v37 = vadd.f32 %v368_v32, %v367_v29  ;;  %v377_v38 = vrot.slane %v376_v34, 4  ;;  %v395_v39 = vrot.slane %v394_v35, 4  ;;  %v364_v40 = vpop.f32.mrf.mxu0 }
 0x2b9   :  { %v405_v41 = vsel %vm88_vm2, %v403_v36, 0.0 }
 0x2ba   :  { %v370_v42 = vrot.slane %v369_v37, 2  ;;  %v378_v43 = vadd.f32 %v377_v38, %v376_v34  ;;  %v396_v44 = vadd.f32 %v395_v39, %v394_v35  ;;  %v406_v45 = vrot.slane %v405_v41, 4  ;;  %v703_v46 = vpop.f32.mrf.mxu0 }
 0x2bc   :  { %v371_v47 = vadd.f32 %v370_v42, %v369_v37  ;;  %v379_v48 = vrot.slane %v378_v43, 2  ;;  %v397_v49 = vrot.slane %v396_v44, 2  ;;  %v407_v50 = vadd.f32 %v406_v45, %v405_v41 }
 0x2be   :  { %v372_v51 = vrot.slane %v371_v47, 1  ;;  %v380_v52 = vadd.f32 %v379_v48, %v378_v43  ;;  %v398_v53 = vadd.f32 %v397_v49, %v396_v44  ;;  %v408_v54 = vrot.slane %v407_v50, 2 }
 0x2c0   :  { %v373_v55 = vadd.f32 %v372_v51, %v371_v47  ;;  %v381_v57 = vrot.slane %v380_v52, 1  ;;  %v399_v58 = vrot.slane %v398_v53, 1  ;;  %v409_v59 = vadd.f32 %v408_v54, %v407_v50 }
 0x2c2   :  { %v374_v60 = vmul.f32 0.5, %v373_v55  ;;  %v382_v61 = vadd.f32 %v381_v57, %v380_v52  ;;  %v400_v62 = vadd.f32 %v399_v58, %v398_v53  ;;  %v410_v63 = vrot.slane %v409_v59, 1 }
 0x2c4   :  { %v383_v1 = vmul.f32 0.5, %v382_v61  ;;  %v384_v2 = vmul.f32 %v374_v60, %v374_v60  ;;  %v401_v3 = vmul.f32 0.5, %v400_v62  ;;  %v411_v4 = vadd.f32 %v410_v63, %v409_v59 }
 0x2c5   :  { %v387_v15 = vsub.f32 %v361_v28, %v374_v60 }
 0x2c6   :  { %v385_v5 = vsub.f32 %v383_v1, %v384_v2  ;;  %v413_v7 = vmul.f32 %v401_v3, %v401_v3  ;;  %v412_v8 = vmul.f32 0.5, %v411_v4  ;;  %v416_v16 = vsub.f32 %v361_v28, %v401_v3 }
 0x2c8   :  { %v386_v9 = vmax.f32 %v385_v5, 0.0  ;;  %v414_v10 = vsub.f32 %v412_v8, %v413_v7  ;;  %v32_v8 = vld [vmem:[%s945_s6 + $0x4] sm:$0x1] }
 0x2ca   :  { %v388_v11 = vadd.f32 1e-05, %v386_v9  ;;  %v415_v12 = vmax.f32 %v414_v10, 0.0 }
 0x2cc   :  { %745 = vrsqrt.f32 %v388_v11  ;;  %v417_v13 = vadd.f32 1e-05, %v415_v12  ;;  %v33_v12 = vld [vmem:[%s945_s6 + $0x5] sm:$0x1] }
 0x2ce   :  { %747 = vrsqrt.f32 %v417_v13 }
 0x2d9   :  { %v746_v14 = vpop.eup %745 }
 0x2da   :  { %v390_v18 = vmul.f32 %v746_v14, %v387_v15 }
 0x2db   :  { %v748_v6 = vpop.eup %747 }
 0x2dc   :  { %v419_v19 = vmul.f32 %v748_v6, %v416_v16 }
 0x2de   :  { %v900_v20 = vsel %vm88_vm2, %v390_v18, %v419_v19 }
 0x2df   :  { %v421_v21 = vpack.c.bf16 %v900_v20, %v900_v20 }
 0x2e1   :  { %713 = vmatmul.mubr.msk.bf16.vlgmr.msra.gmra.mxu1 %vm454_vm4, %v421_v21 }
 0x3a1   :  { %v911_v24 = vpop.f32.mrf.mxu1 }
 0x3a2   :  { %v498_v25 = vsel %vm88_vm2, %v911_v24, 0.0  ;;  %v506_v17 = vmul.f32 %v911_v24, %v911_v24  ;;  %v535_v26 = vrot.slane %v911_v24, 2 }
 0x3a3   :  { %v499_v27 = vrot.slane %v498_v25, 4  ;;  %v714_v28 = vpop.f32.mrf.mxu1 }
 0x3a4   :  { %v507_v29 = vsel %vm88_vm2, %v506_v17, 0.0  ;;  %v537_v0 = vsel %vm88_vm2, %v535_v26, 0.0  ;;  %v546_v30 = vrot.slane %v506_v17, 2 }
 0x3a5   :  { %v500_v31 = vadd.f32 %v499_v27, %v498_v25  ;;  %v508_v32 = vrot.slane %v507_v29, 4  ;;  %v538_v33 = vrot.slane %v537_v0, 4  ;;  %v495_v34 = vpop.f32.mrf.mxu1 }
 0x3a6   :  { %v548_v35 = vsel %vm88_vm2, %v546_v30, 0.0  ;;  %v662_v30 = vld [vmem:[%s945_s6 + $0x6] ss:$0 sm:$0xff] }
 0x3a7   :  { %v501_v36 = vrot.slane %v500_v31, 2  ;;  %v509_v37 = vadd.f32 %v508_v32, %v507_v29  ;;  %v539_v38 = vadd.f32 %v538_v33, %v537_v0  ;;  %v549_v39 = vrot.slane %v548_v35, 4  ;;  %v715_v40 = vpop.f32.mrf.mxu1 }
 0x3a9   :  { %v502_v41 = vadd.f32 %v501_v36, %v500_v31  ;;  %v510_v42 = vrot.slane %v509_v37, 2  ;;  %v540_v43 = vrot.slane %v539_v38, 2  ;;  %v550_v44 = vadd.f32 %v549_v39, %v548_v35 }
 0x3ab   :  { %v503_v45 = vrot.slane %v502_v41, 1  ;;  %v511_v46 = vadd.f32 %v510_v42, %v509_v37  ;;  %v541_v47 = vadd.f32 %v540_v43, %v539_v38  ;;  %v551_v48 = vrot.slane %v550_v44, 2 }
 0x3ad   :  { %v504_v49 = vadd.f32 %v503_v45, %v502_v41  ;;  %v512_v50 = vrot.slane %v511_v46, 1  ;;  %v542_v51 = vrot.slane %v541_v47, 1  ;;  %v552_v52 = vadd.f32 %v551_v48, %v550_v44 }
 0x3af   :  { %v505_v53 = vmul.f32 0.5, %v504_v49  ;;  %v513_v54 = vadd.f32 %v512_v50, %v511_v46  ;;  %v543_v55 = vadd.f32 %v542_v51, %v541_v47  ;;  %v553_v57 = vrot.slane %v552_v52, 1 }
 0x3b1   :  { %v514_v58 = vmul.f32 0.5, %v513_v54  ;;  %v515_v59 = vmul.f32 %v505_v53, %v505_v53  ;;  %v544_v60 = vmul.f32 0.5, %v543_v55  ;;  %v554_v61 = vadd.f32 %v553_v57, %v552_v52 }
 0x3b3   :  { %v516_v62 = vsub.f32 %v514_v58, %v515_v59  ;;  %v555_v63 = vmul.f32 0.5, %v554_v61  ;;  %v556_v1 = vmul.f32 %v544_v60, %v544_v60 }
 0x3b5   :  { %v517_v2 = vmax.f32 %v516_v62, 0.0  ;;  %v557_v3 = vsub.f32 %v555_v63, %v556_v1 }
 0x3b7   :  { %v518_v4 = vadd.f32 1e-05, %v517_v2  ;;  %v558_v5 = vmax.f32 %v557_v3, 0.0 }
 0x3b9   :  { %749 = vrsqrt.f32 %v518_v4  ;;  %v559_v7 = vadd.f32 1e-05, %v558_v5 }
 0x3bb   :  { %751 = vrsqrt.f32 %v559_v7 }
 0x3c6   :  { %v750_v9 = vpop.eup %749 }
 0x3c7   :  { %v520_v10 = vmul.f32 %v750_v9, %v32_v8 }
 0x3c8   :  { %v752_v11 = vpop.eup %751 }
 0x3c9   :  { %v524_v13 = vrot.slane %v520_v10, %v831_v56  ;;  %v526_v14 = vmul.f32 %v520_v10, %v505_v53  ;;  %v561_v15 = vmul.f32 %v752_v11, %v32_v8 }
 0x3cb   :  { %v527_v16 = vsub.f32 %v33_v12, %v526_v14  ;;  %v565_v6 = vrot.slane %v561_v15, %v831_v56  ;;  %v567_v18 = vmul.f32 %v561_v15, %v544_v60  ;;  %v525_v19 = vmul.f32 %v524_v13, %v911_v24 }
 0x3cd   :  { %v531_v21 = vrot.slane %v527_v16, %v831_v56  ;;  %v568_v22 = vsub.f32 %v33_v12, %v567_v18  ;;  %v566_v25 = vmul.f32 %v565_v6, %v911_v24 }
 0x3cf   :  { %v532_v23 = vadd.f32 %v531_v21, %v525_v19  ;;  %v572_v17 = vrot.slane %v568_v22, %v831_v56 }
 0x3d1   :  { %v573_v26 = vadd.f32 %v572_v17, %v566_v25  ;;  %v533_v27 = vmax.f32 %v532_v23, 0.0 }
 0x3d3   :  { %v574_v28 = vmax.f32 %v573_v26, 0.0 }
 0x3d5   :  { %v575_v29 = vsel %vm88_vm2, %v533_v27, %v574_v28 }
 0x3d6   :  { %v576_v0 = vpack.c.bf16 %v575_v29, %v575_v29 }
 0x3d8   :  { %721 = vmatmul.mubr.msk.bf16.vlgmr.msra.gmra.mxu0 %vm185_vm3, %v576_v0 }
 0x498   :  { %v634_v31 = vpop.f32.mrf.mxu0 }
 0x499   :  { %v635_v32 = vadd.f32 %v662_v30, %v634_v31 }
 0x49a   :  { %v722_v33 = vpop.f32.mrf.mxu0 }
 0x49b   :  { %v642_v34 = vcombine.low %v900_v20, %v635_v32 }
 0x49c   :  { %v637_v24 = vpop.f32.mrf.mxu0 }
 0x49d   :  { %644 = vst [vmem:[%s949_s7] sm:$0xff] %v642_v34 }
 0x49e   :  { %v723_v56 = vpop.f32.mrf.mxu0 }

</bundles_post_ra>
